<compile_context>
chip_gen: v5e
topology: v5e:2x2
jax: 0.10.0
libtpu: 0.0.40
codegen_flags: <defaults>
</compile_context>

<pallas_src>
import functools

import jax
import jax.numpy as jnp
from jax.experimental import pallas as pl
from jax.experimental.pallas import tpu as pltpu


# ----------------------------------------------------------------------------
# Kernels
# ----------------------------------------------------------------------------

def _se_fused_kernel(x_ref, w1_ref, w2_ref, o_ref, *, scale_in_bf16):
    # x_ref/o_ref: (Bt, C, HW)  (lane axis = HW),  w1: (C, Cr), w2: (Cr, C)
    # Squeeze: global average pool over the spatial (lane) axis -> (Bt, C)
    y = jnp.mean(x_ref[...].astype(jnp.float32), axis=-1)
    # Excitation: Linear -> ReLU -> Linear -> Sigmoid (always f32)
    h = jnp.maximum(jnp.dot(y, w1_ref[...], preferred_element_type=jnp.float32), 0.0)
    g = jax.nn.sigmoid(jnp.dot(h, w2_ref[...], preferred_element_type=jnp.float32))
    # Scale: re-read x from the input VMEM buffer; multiply in bf16 on chips
    # with a native bf16 VALU (v6e/v7x), otherwise in f32.
    if scale_in_bf16:
        o_ref[...] = (x_ref[...] * g.astype(x_ref.dtype)[:, :, None]).astype(o_ref.dtype)
    else:
        o_ref[...] = (x_ref[...].astype(jnp.float32) * g[:, :, None]).astype(o_ref.dtype)


def _se_pool_gate_kernel(x_ref, w1_ref, w2_ref, g_ref, acc_ref, *, hw, hw_tile):
    # Split path pass 1.  grid = (B tiles, HW tiles); HW is the (last,
    # "arbitrary") reduction axis; the gate is computed on the last HW tile.
    t = pl.program_id(1)

    @pl.when(t == 0)
    def _():
        acc_ref[...] = jnp.zeros_like(acc_ref)

    x = x_ref[...].astype(jnp.float32)                    # (Bt, C, HWt)
    if hw % hw_tile != 0:
        # Mask out-of-range lanes of the ragged last tile before reducing.
        col = jax.lax.broadcasted_iota(jnp.int32, x.shape, 2) + t * hw_tile
        x = jnp.where(col < hw, x, 0.0)
    acc_ref[...] += jnp.sum(x, axis=-1)                   # (Bt, C)

    @pl.when(t == pl.num_programs(1) - 1)
    def _():
        y = acc_ref[...] * (1.0 / hw)                     # mean
        h = jnp.maximum(jnp.dot(y, w1_ref[...], preferred_element_type=jnp.float32), 0.0)
        g = jax.nn.sigmoid(jnp.dot(h, w2_ref[...], preferred_element_type=jnp.float32))
        g_ref[...] = g[:, None, :]                        # (Bt, 1, C), lane-dense f32


def _se_scale_kernel(x_ref, g_ref, o_ref, *, scale_in_bf16):
    # Split path pass 2: pure HBM streamer.  x_ref/o_ref: (Bt, C, HWt),
    # g_ref: (Bt, C, 1) f32.
    if scale_in_bf16:
        o_ref[...] = (x_ref[...] * g_ref[...].astype(x_ref.dtype)).astype(o_ref.dtype)
    else:
        o_ref[...] = (x_ref[...].astype(jnp.float32) * g_ref[...]).astype(o_ref.dtype)


# ----------------------------------------------------------------------------
# Wrapper helpers
# ----------------------------------------------------------------------------

def _vmem_capacity_bytes():
    try:
        cap = getattr(pltpu.get_tpu_info(), "vmem_capacity_bytes", None)
        if cap:
            return int(cap)
    except Exception:
        pass
    return 64 * 1024 * 1024  # conservative (v7x per-TensorCore)


def _bf16_scale_ok():
    """bf16 VALU is native on v6e / v7x; older generations (<= v5) lack it."""
    try:
        kind = jax.devices()[0].device_kind.lower()
    except Exception:
        return False
    return not any(old in kind for old in ("v2", "v3", "v4", "v5"))


def _pick_bt(batch, bt_cap):
    """Largest divisor Bt of `batch` <= bt_cap that keeps a deep, even grid:
    at least min(batch, 4) steps, and an even step count when batch is even
    (so both v7x TensorCores get balanced work)."""
    best = 1
    min_steps = min(batch, 4)
    cap = max(1, int(bt_cap))
    for d in range(1, batch + 1):
        if batch % d != 0 or d > cap:
            continue
        steps = batch // d
        if steps < min_steps:
            continue
        if batch % 2 == 0 and steps % 2 != 0:
            continue
        best = max(best, d)
    return best


# ----------------------------------------------------------------------------
# Wrapper
# ----------------------------------------------------------------------------

def se_block(x, w1, w2, *, force_split=False, hw_tile=None, alias_input=False):
    """SEBlock forward: out = x * sigmoid(relu(mean_hw(x) @ w1) @ w2)[..., None, None]

    x  : (B, C, H, W)  NCHW, f32 or bf16.  Gate math (pool/FC/sigmoid) is
         always f32; the final scale runs in bf16 on v6e/v7x when x is bf16.
         bf16 I/O is recommended on every generation (the op is HBM-bound;
         on v5e, ~820 GB/s and a single vst slot, it is the only ~2x lever;
         on v7x it also doubles the fused-path VMEM cutover).
    w1 : (C, C//r)     == PyTorch fc[0].weight.T
    w2 : (C//r, C)     == PyTorch fc[2].weight.T
    alias_input : pass input_output_aliases={0: 0} so the output reuses x's
         buffer (only when the caller no longer needs x).
    """
    B, C, H, W = x.shape
    Cr = w1.shape[1]
    HW = H * W
    act_bytes = jnp.dtype(x.dtype).itemsize

    w1 = jnp.asarray(w1, jnp.float32)
    w2 = jnp.asarray(w2, jnp.float32)
    w_bytes = 2 * C * Cr * 4
    w_res = 2 * w_bytes                 # weights, (potentially) double-buffered

    scale_in_bf16 = bool(x.dtype == jnp.bfloat16) and _bf16_scale_ok()

    vmem_cap = _vmem_capacity_bytes()   # per-core: 128 MiB v5e/v6e, 64 MiB v7x
    margin = 4 << 20                    # headroom for temps / Mosaic scratch
    avail = vmem_cap - w_res - margin   # budget for double-buffered x/out tiles

    slab = C * HW * act_bytes           # one image, one direction
    fused_ok = (not force_split) and (4 * slab <= avail)

    x3 = x.reshape(B, C, HW)
    aliases = {0: 0} if alias_input else {}

    if fused_ok:
        # ---- fused fast path: whole (C, HW) slab(s) per grid step ----------
        # Cap the per-step tile at a few MiB: HBM streaming already sits on
        # the roofline plateau there; bigger tiles only shrink the grid
        # (worse pipelining / megacore balance) and waste VMEM.
        tile_target = 4 << 20
        bt_cap = min(max(1, avail // (4 * slab)), max(1, tile_target // slab))
        Bt = _pick_bt(B, bt_cap)

        need = 4 * Bt * slab + w_res + margin
        vmem_limit = int(min(vmem_cap, max(need, 16 << 20)))

        out3 = pl.pallas_call(
            functools.partial(_se_fused_kernel, scale_in_bf16=scale_in_bf16),
            out_shape=jax.ShapeDtypeStruct((B, C, HW), x.dtype),
            grid_spec=pltpu.PrefetchScalarGridSpec(
                num_scalar_prefetch=0,
                grid=(B // Bt,),
                in_specs=[
                    pl.BlockSpec((Bt, C, HW), lambda b: (b, 0, 0)),
                    pl.BlockSpec((C, Cr), lambda b: (0, 0)),
                    pl.BlockSpec((Cr, C), lambda b: (0, 0)),
                ],
                out_specs=pl.BlockSpec((Bt, C, HW), lambda b: (b, 0, 0)),
            ),
            compiler_params=pltpu.CompilerParams(
                dimension_semantics=("parallel",),
                vmem_limit_bytes=vmem_limit,
            ),
            cost_estimate=pl.CostEstimate(
                flops=int(B * (2 * C * HW + 4 * C * Cr)),
                transcendentals=int(B * C),
                bytes_accessed=int(2 * B * C * HW * act_bytes + w_bytes),
            ),
            input_output_aliases=aliases,
        )(x3, w1, w2)
        return out3.reshape(B, C, H, W)

    # ---- split path: (1) pool + gate over HW tiles, (2) scale streamer -----
    Bt = 1  # images are large here; the HW axis supplies the grid parallelism
    if hw_tile is not None:
        HWt = max(1, min(int(hw_tile), HW))
    else:
        # Keep each streamed block around ~2 MiB; when C is small use a larger
        # lane quantum (512) so per-step overhead stays amortized.
        lane_q = 512 if C < 512 else 128
        target = 2 << 20
        hwt = max(lane_q, target // max(1, C * act_bytes))
        HWt = min(HW, (hwt // lane_q) * lane_q)
        if HWt <= 0:
            HWt = min(HW, lane_q)
    n_hw = pl.cdiv(HW, HWt)

    tile_bytes = Bt * C * HWt * act_bytes
    pool_need = 2 * tile_bytes + w_res + Bt * C * 4 + margin
    scale_need = 4 * tile_bytes + 4 * Bt * C * 4 + margin

    gates = pl.pallas_call(
        functools.partial(_se_pool_gate_kernel, hw=HW, hw_tile=HWt),
        out_shape=jax.ShapeDtypeStruct((B, 1, C), jnp.float32),
        grid_spec=pltpu.PrefetchScalarGridSpec(
            num_scalar_prefetch=0,
            grid=(B // Bt, n_hw),
            in_specs=[
                pl.BlockSpec((Bt, C, HWt), lambda b, t: (b, 0, t)),
                pl.BlockSpec((C, Cr), lambda b, t: (0, 0)),
                pl.BlockSpec((Cr, C), lambda b, t: (0, 0)),
            ],
            out_specs=pl.BlockSpec((Bt, 1, C), lambda b, t: (b, 0, 0)),
            scratch_shapes=[pltpu.VMEM((Bt, C), jnp.float32)],
        ),
        compiler_params=pltpu.CompilerParams(
            dimension_semantics=("parallel", "arbitrary"),
            vmem_limit_bytes=int(min(vmem_cap, max(pool_need, 16 << 20))),
        ),
        cost_estimate=pl.CostEstimate(
            flops=int(B * C * HW + 4 * B * C * Cr),
            transcendentals=int(B * C),
            bytes_accessed=int(B * C * HW * act_bytes + B * C * 4 + w_bytes),
        ),
    )(x3, w1, w2)

    # Tiny (B*C floats) layout fixup outside the kernel: lane-dense gate store
    # above, sublane-broadcastable (B, C, 1) view for the streaming pass.
    g3 = jnp.swapaxes(gates, 1, 2)

    out3 = pl.pallas_call(
        functools.partial(_se_scale_kernel, scale_in_bf16=scale_in_bf16),
        out_shape=jax.ShapeDtypeStruct((B, C, HW), x.dtype),
        grid_spec=pltpu.PrefetchScalarGridSpec(
            num_scalar_prefetch=0,
            grid=(B // Bt, n_hw),
            in_specs=[
                pl.BlockSpec((Bt, C, HWt), lambda b, t: (b, 0, t)),
                pl.BlockSpec((Bt, C, 1), lambda b, t: (b, 0, 0)),
            ],
            out_specs=pl.BlockSpec((Bt, C, HWt), lambda b, t: (b, 0, t)),
        ),
        compiler_params=pltpu.CompilerParams(
            dimension_semantics=("parallel", "parallel"),
            vmem_limit_bytes=int(min(vmem_cap, max(scale_need, 16 << 20))),
        ),
        cost_estimate=pl.CostEstimate(
            flops=int(B * C * HW),
            transcendentals=0,
            bytes_accessed=int(2 * B * C * HW * act_bytes + B * C * 4),
        ),
        input_output_aliases=aliases,
    )(x3, g3)
    return out3.reshape(B, C, H, W)


def se_block_reference(x, w1, w2):
    """Pure-JAX reference mirroring the PyTorch forward (f32 result)."""
    xf = x.astype(jnp.float32)
    y = jnp.mean(xf, axis=(2, 3))
    y = jnp.maximum(y @ w1.astype(jnp.float32), 0.0)
    y = jax.nn.sigmoid(y @ w2.astype(jnp.float32))
    return xf * y[:, :, None, None]


if __name__ == "__main__":
    key = jax.random.PRNGKey(0)
    kx, k1, k2, kx2, k3, k4 = jax.random.split(key, 6)
    reduction = 16

    # ---- test 1: small NCHW f32, fused path (lane axis = HW = 256) --------
    B, C, H, W = 2, 32, 16, 16
    Cr = C // reduction
    x = jax.random.normal(kx, (B, C, H, W), dtype=jnp.float32)
    b1, b2 = 1.0 / (C ** 0.5), 1.0 / (Cr ** 0.5)
    w1 = jax.random.uniform(k1, (C, Cr), jnp.float32, -b1, b1)
    w2 = jax.random.uniform(k2, (Cr, C), jnp.float32, -b2, b2)

    out = jax.block_until_ready(se_block(x, w1, w2))
    ref = se_block_reference(x, w1, w2)
    assert out.shape == (B, C, H, W)
    assert jnp.allclose(out, ref, atol=1e-5, rtol=1e-5)

    # ---- test 2: bf16 activations, fused path (scale in bf16 on v6e/v7x) --
    xb = x.astype(jnp.bfloat16)
    outb = jax.block_until_ready(se_block(xb, w1, w2))
    refb = se_block_reference(xb, w1, w2)
    assert outb.dtype == jnp.bfloat16
    assert jnp.allclose(outb.astype(jnp.float32), refb, atol=5e-2, rtol=5e-2)

    # ---- test 3: HW not a multiple of 128 (C=128, HW=49) — NCHW fused path,
    #              masked stores instead of wrapper-side transposes ----------
    B2, C2, H2, W2 = 2, 128, 7, 7
    Cr2 = C2 // reduction
    x2 = jax.random.normal(kx2, (B2, C2, H2, W2), dtype=jnp.float32)
    b1b, b2b = 1.0 / (C2 ** 0.5), 1.0 / (Cr2 ** 0.5)
    w1b = jax.random.uniform(k3, (C2, Cr2), jnp.float32, -b1b, b1b)
    w2b = jax.random.uniform(k4, (Cr2, C2), jnp.float32, -b2b, b2b)

    out2 = jax.block_until_ready(se_block(x2, w1b, w2b))
    ref2 = se_block_reference(x2, w1b, w2b)
    assert jnp.allclose(out2, ref2, atol=1e-5, rtol=1e-5)

    # ---- test 4: forced split path (pool+gate kernel, then scale stream) --
    out_s = jax.block_until_ready(se_block(x, w1, w2, force_split=True, hw_tile=128))
    assert jnp.allclose(out_s, ref, atol=1e-5, rtol=1e-5)

    # ---- test 5: forced split path with bf16 activations -------------------
    out_sb = jax.block_until_ready(se_block(xb, w1, w2, force_split=True, hw_tile=128))
    assert out_sb.dtype == jnp.bfloat16
    assert jnp.allclose(out_sb.astype(jnp.float32), refb, atol=5e-2, rtol=5e-2)

    print("KERNEL_OK")
</pallas_src>

<mosaic_0001>
module attributes {stable_mosaic.version = 11 : i64} {
  func.func @_se_fused_kernel(%arg0: i32, %arg1: memref<1x32x256xf32, #tpu.memory_space<vmem>>, %arg2: memref<32x2xf32, #tpu.memory_space<vmem>>, %arg3: memref<2x32xf32, #tpu.memory_space<vmem>>, %arg4: memref<1x32x256xf32, #tpu.memory_space<vmem>>) attributes {dimension_semantics = [#tpu.dimension_semantics<parallel>], iteration_bounds = array<i64: 2>, scalar_prefetch = 0 : i64, scratch_operands = 0 : i64, tpu.core_type = #tpu.core_type<tc>, window_params = [{transform_indices = @transform_0, window_bounds = array<i64: 1, 32, 256>}, {pipeline_mode = #tpu.pipeline_mode<synchronous>, transform_indices = @transform_1, window_bounds = array<i64: 32, 2>}, {pipeline_mode = #tpu.pipeline_mode<synchronous>, transform_indices = @transform_2, window_bounds = array<i64: 2, 32>}, {transform_indices = @transform_3, window_bounds = array<i64: 1, 32, 256>}]} {
    %c0 = arith.constant 0 : index
    %c0_0 = arith.constant 0 : index
    %c0_1 = arith.constant 0 : index
    %0 = vector.load %arg1[%c0, %c0_0, %c0_1] : memref<1x32x256xf32, #tpu.memory_space<vmem>>, vector<1x32x256xf32>
    %cst = arith.constant dense<0.000000e+00> : vector<1x32xf32>
    %1 = vector.multi_reduction <add>, %0, %cst [2] : vector<1x32x256xf32> to vector<1x32xf32>
    %cst_2 = arith.constant 2.560000e+02 : f32
    %2 = vector.broadcast %cst_2 : f32 to vector<1x32xf32>
    %3 = arith.divf %1, %2 : vector<1x32xf32>
    %c0_3 = arith.constant 0 : index
    %c0_4 = arith.constant 0 : index
    %4 = vector.load %arg2[%c0_3, %c0_4] : memref<32x2xf32, #tpu.memory_space<vmem>>, vector<32x2xf32>
    %cst_5 = arith.constant dense<0.000000e+00> : vector<1x2xf32>
    %5 = tpu.matmul %3, %4, %cst_5 {dimension_numbers = #tpu.dot_dimension_numbers<[1], [0], [0], [1], [0, 0, 1, 1], [], []>} : vector<1x32xf32>, vector<32x2xf32>, vector<1x2xf32> -> vector<1x2xf32>
    %cst_6 = arith.constant 0.000000e+00 : f32
    %6 = vector.broadcast %cst_6 : f32 to vector<1x2xf32>
    %7 = arith.maximumf %5, %6 : vector<1x2xf32>
    %c0_7 = arith.constant 0 : index
    %c0_8 = arith.constant 0 : index
    %8 = vector.load %arg3[%c0_7, %c0_8] : memref<2x32xf32, #tpu.memory_space<vmem>>, vector<2x32xf32>
    %cst_9 = arith.constant dense<0.000000e+00> : vector<1x32xf32>
    %9 = tpu.matmul %7, %8, %cst_9 {dimension_numbers = #tpu.dot_dimension_numbers<[1], [0], [0], [1], [0, 0, 1, 1], [], []>} : vector<1x2xf32>, vector<2x32xf32>, vector<1x32xf32> -> vector<1x32xf32>
    %10 = arith.negf %9 : vector<1x32xf32>
    %11 = math.exp %10 : vector<1x32xf32>
    %cst_10 = arith.constant 1.000000e+00 : f32
    %12 = vector.broadcast %cst_10 : f32 to vector<1x32xf32>
    %13 = arith.addf %12, %11 : vector<1x32xf32>
    %14 = arith.divf %12, %13 : vector<1x32xf32>
    %c0_11 = arith.constant 0 : index
    %c0_12 = arith.constant 0 : index
    %c0_13 = arith.constant 0 : index
    %15 = vector.load %arg1[%c0_11, %c0_12, %c0_13] : memref<1x32x256xf32, #tpu.memory_space<vmem>>, vector<1x32x256xf32>
    %16 = vector.shape_cast %14 : vector<1x32xf32> to vector<1x32x1xf32>
    %17 = vector.broadcast %16 : vector<1x32x1xf32> to vector<1x32x256xf32>
    %18 = arith.mulf %15, %17 : vector<1x32x256xf32>
    %c0_14 = arith.constant 0 : index
    %c0_15 = arith.constant 0 : index
    %c0_16 = arith.constant 0 : index
    %19 = vector.load %arg4[%c0_14, %c0_15, %c0_16] : memref<1x32x256xf32, #tpu.memory_space<vmem>>, vector<1x32x256xf32>
    tpu.vector_store %arg4[%c0_14, %c0_15, %c0_16], %18 {strides = array<i32>} : memref<1x32x256xf32, #tpu.memory_space<vmem>>, vector<1x32x256xf32>,
    return
  }
  func.func @transform_0(%arg0: i32) -> (i32, i32, i32) {
    %c0_i32 = arith.constant 0 : i32
    %c0_i32_0 = arith.constant 0 : i32
    %c0_i32_1 = arith.constant 0 : i32
    return %arg0, %c0_i32, %c0_i32_0 : i32, i32, i32
  }
  func.func @transform_1(%arg0: i32) -> (i32, i32) {
    %c0_i32 = arith.constant 0 : i32
    %c0_i32_0 = arith.constant 0 : i32
    %c0_i32_1 = arith.constant 0 : i32
    return %c0_i32, %c0_i32_0 : i32, i32
  }
  func.func @transform_2(%arg0: i32) -> (i32, i32) {
    %c0_i32 = arith.constant 0 : i32
    %c0_i32_0 = arith.constant 0 : i32
    %c0_i32_1 = arith.constant 0 : i32
    return %c0_i32, %c0_i32_0 : i32, i32
  }
  func.func @transform_3(%arg0: i32) -> (i32, i32, i32) {
    %c0_i32 = arith.constant 0 : i32
    %c0_i32_0 = arith.constant 0 : i32
    %c0_i32_1 = arith.constant 0 : i32
    return %arg0, %c0_i32, %c0_i32_0 : i32, i32, i32
  }
}

</mosaic_0001>

<bundles_post_ra>
// kernel: tpu_custom_call.1
= control target key start
LH: loop header
LB: loop body
LE: loop exit
PB: predicated region body
PF: predicated region fallthrough
CT: control target
= control target key end

     0   :  { %8 = vsyncpa [#allocation3], 0  ;;  %s830_s0 = inlined_call_operand.hbm [shape: f32[2,32,256], index: 0, kind: input, shape index: {}]   ;;  %s831_s1 = inlined_call_operand.vmem [shape: f32[32,2], index: 1, kind: input, shape index: {}]   ;;  %s832_s2 = inlined_call_operand.vmem [shape: f32[2,32], index: 2, kind: input, shape index: {}]   ;;  %s833_s3 = inlined_call_operand.hbm [shape: f32[2,32,256], index: 3, kind: output, shape index: {}]  }
   0x1   :  { %10 = vsyncpa [#allocation3 + $0x1], 0 }
   0x2   :  { %11 = vsyncpa [#allocation4], 0 }
   0x3   :  { %13 = vsyncpa [#allocation4 + $0x1], 0  ;;  %s652_s12 = smov 0   ;;  %s654_s13 = smov 0  }
   0x4   :  { %s656_s14 = smov 0   ;;  %s658_s15 = smov 0  }
   0x5 LB: > { %s673_s16 = sadd.s32 4294967295, %s625_s15   ;;  %s447_s17 = sadd.s32 4294967294, %s625_s15   ;;  %s625_s15 = sphi %s658_s15, %s843_s15   ;;  %s621_s14 = sphi %s656_s14, %s842_s14   ;;  %s617_s13 = sphi %s654_s13, %s841_s13   ;;  %s613_s12 = sphi %s652_s12, %s840_s12  }
   0x6   : > { %s677_s18 = sadd.s32 1, %s625_s15   ;;  %s26_s19 = sadd.s32 1, %s621_s14 }
   0x7   : > { %s23_s20 = ssub.s32 %s625_s15, %s677_s18  ;;  %p33_p0 = scmp.ne.s32.totalorder %s621_s14, %s617_s13 }
   0x8   : > { %p24_p1 = scmp.eq.s32.totalorder %s23_s20, 0  ;;  %p34_p2 = scmp.eq.s32.totalorder %s625_s15, 0 }
   0x9   : > { %p39_p3 = scmp.ne.s32.totalorder %s617_s13, %s613_s12  ;;  %p40_p4 = scmp.eq.s32.totalorder %s673_s16, 0 }
   0xa   : > { %s689_s21 = scalar_select %p24_p1, %s621_s14, %s26_s19  }
   0xb   : > { %p691_p5 = por %p34_p2, %p33_p0  ;;  %p695_p6 = por %p40_p4, %p39_p3 }
   0xc   : > { %p105_p7 = scmp.eq.s32.totalorder %s673_s16, 1  ;;  %p111_p8 = scmp.eq.s32.totalorder %s447_s17, 1 }
   0xd   : > { %p479_p10 = scmp.lt.s32.totalorder %s625_s15, 2  ;;  %s137_s26 = sand.u32 1, %s621_s14  }
   0xe   : > { %p702_p11 = por %p105_p7, %p33_p0  ;;  %p706_p12 = por %p111_p8, %p39_p3 }
   0xf   : > { %s465_s27 = sshll.u32 %s625_s15, 6  ;;  %s450_s28 = sshll.u32 %s137_s26, 6 }
  0x10   : > { %s146_s4 = scalar_lea.hbm %s830_s0, %s465_s27  ;;  %s141_s6 = scalar_lea.vmem [#allocation2], %s450_s28 }
  0x11   : > { %s147_s5 = sshll.u32 %s146_s4, 4  ;;  %s149_s7 = sshll.u32 %s141_s6, 4  ;;  %s148_s5 = int_to_ptr.hbm [resolvable:$true] %s147_s5  ;;  %s150_s7 = int_to_ptr.vmem [resolvable:$true] %s149_s7 }
  0x12   : > { %p717_p13 = pnand %p479_p10, %p691_p5  ;;  %p453_p0 = scmp.ge.s32.totalorder %s625_s15, 1 }
  0x13   : > { %p157_p1 = scmp.lt.s32.totalorder %s625_s15, 3  ;;  %s138_s9 = scalar_lea.sflag [#allocation3], %s137_s26 }
  0x14   : > { %s529_s10 = sshra.s32 %s148_s5, 4  ;;  %p533_p3 = pneg %p717_p13  ;;  %s530_s10 = int_to_ptr.hbm [resolvable:$true] %s529_s10 }
  0x15   : > { %s531_s11 = scalar_lea.hbm %s530_s10, 64  ;;  %s536_s20 = scalar_lea.hbm %s830_s0, 128 }
  0x16   : > { %p532_p2 = scmp.ne.s32.totalorder %s530_s10, %s531_s11  ;;  %p537_p5 = scmp.lt.s32.totalorder %s530_s10, %s830_s0 }
  0x17   : > { %p538_p8 = scmp.lt.s32.totalorder %s536_s20, %s531_s11 }
  0x18   : > { %p534_p4 = pnand %p533_p3, %p532_p2 }
  0x19   : > { %p539_p10 = por %p538_p8, %p537_p5 }
  0x1a   : > { %p535_p7 = pneg %p534_p4 }
  0x1c   : > { %p540_p9 = pnand %p539_p10, %p535_p7 }
  0x1e   : > { %543 = shalt.err (!%p540_p9)
}
  0x1f   : > { %s627_s26 = smov 256   ;;  %s628_s28 = smov 16  }
  0x20   : > { %474 = dma.hbm_to_vmem [thread:$0]  (!%p717_p13), %s148_s5, 1024, %s150_s7, %s138_s9, %s627_s26, %s627_s26, %s628_s28  }
  0x21   : > { %p158_p2 = pnand %p453_p0, %p157_p1 }
  0x22   : > { %s738_s29 = sand.u32 (!%p158_p2), 1, %s617_s13  }
  0x23   : > { %161 = sbr.rel (%p158_p2) target bundleno = 583 (0x247), region = 32  ;;  %s454_s30 = sshll.u32 (!%p158_p2), %s738_s29, 6 }
  0x24   : > { %s164_s4 = scalar_lea.sflag (!%p158_p2), [#allocation3], %s738_s29  ;;  %s167_s6 = scalar_lea.vmem (!%p158_p2), [#allocation2], %s454_s30 }
  0x28   : > { %604 = dma.done.wait (%p695_p6), %s164_s4, 1024  }
  0x29   : > { %606 = vsyncadd (%p695_p6), %s164_s4, 4294966272  ;;  %v748_v0 = vld [vmem:[%s167_s6] sm:$0xff]  ;;  %v750_v1 = vld [vmem:[%s167_s6 + $0x8] sm:$0xff]  ;;  %v629_v14 = vmov 256.0   ;;  %v230_v22 = vlaneseq  ;;  %vm235_vm1 = vcmask 130112   ;;  %vm239_vm2 = vcmask 195712  }
  0x2a   : > { %v752_v2 = vld [vmem:[%s167_s6 + $0x20] sm:$0xff]  ;;  %v199_v3 = vadd.f32 %v750_v1, %v748_v0  ;;  %v756_v4 = vld [vmem:[%s167_s6 + $0x28] sm:$0xff]  ;;  %v760_v6 = vld [vmem:[%s167_s6 + $0x10] sm:$0xff]  ;;  %523 = vrcp.f32 %v629_v14  ;;  %vm243_vm3 = vcmask 261312   ;;  %vm245_vm4 = vcmask 261120   ;;  %s190_s22 = scalar_lea.vmem [#allocation5], %s454_s30 }
  0x2b   : > { %v205_v5 = vadd.f32 %v756_v4, %v752_v2  ;;  %v762_v7 = vld [vmem:[%s167_s6 + $0x18] sm:$0xff]  ;;  %v764_v8 = vld [vmem:[%s167_s6 + $0x30] sm:$0xff]  ;;  %v223_v15 = vld [vmem:[%s831_s1 + $0x8] sm:$0xff]  ;;  %v231_v26 = vand.u32 127, %v230_v22  ;;  %vm274_vm5 = vcmask 1041408   ;;  %vm270_vm6 = vcmask 15360  }
  0x2c   : > { %200 = vadd.xlane.f32.xlu0 %v199_v3  ;;  %v766_v9 = vld [vmem:[%s167_s6 + $0x38] sm:$0xff]  ;;  %v202_v10 = vadd.f32 %v762_v7, %v760_v6  ;;  %v224_v13 = vld [vmem:[%s831_s1 + $0x10] sm:$0xff]  ;;  %v222_v16 = vld [vmem:[%s831_s1] sm:$0xff]  ;;  %v319_v46 = vshrl.u32 %v230_v22, 7  ;;  %s466_s27 = sshll.u32 %s673_s16, 6  ;;  %s371_s6 = sshll.u32 %s190_s22, 4  ;;  %s372_s6 = int_to_ptr.vmem [resolvable:$true] %s371_s6 }
  0x2d   : > { %206 = vadd.xlane.f32.xlu1 %v205_v5  ;;  %v208_v11 = vadd.f32 %v766_v9, %v764_v8  ;;  %v225_v12 = vld [vmem:[%s831_s1 + $0x18] sm:$0xff]  ;;  %v233_v28 = vadd.s32 4294967288, %v231_v26  ;;  %v237_v29 = vadd.s32 4294967280, %v231_v26  ;;  %v241_v32 = vadd.s32 4294967272, %v231_v26  ;;  %v269_v43 = vld [vmem:[%s832_s2] sm:$0x3]  ;;  %s370_s4 = scalar_lea.hbm %s833_s3, %s466_s27 }
  0x2e   : > { %260 = vmatpush.msra.mxu0 %v225_v12  ;;  %457 = vmatpush.msk.msra.mxu1 %vm274_vm5, %v269_v43  ;;  %v338_v47 = vadd.s32 24, %v319_v46  ;;  %v332_v48 = vadd.s32 16, %v319_v46  ;;  %v326_v3 = vadd.s32 8, %v319_v46  ;;  %s373_s23 = sshll.u32 %s370_s4, 4  ;;  %s359_s16 = scalar_lea.sflag [#allocation4], %s738_s29  ;;  %s374_s23 = int_to_ptr.hbm [resolvable:$true] %s373_s23 }
  0x2f   : > { %518 = vset.pattern.permute.xlu2 %v319_v46  ;;  %s573_s30 = sshra.s32 %s374_s23, 4  ;;  %s579_s9 = scalar_lea.hbm %s833_s3, 128  ;;  %s574_s30 = int_to_ptr.hbm [resolvable:$true] %s573_s30 }
  0x30   : > { %261 = vmatpush.msra.mxu0 %v224_v13  ;;  %v524_v17 = vpop.eup %523  ;;  %521 = vset.pattern.permute.xlu1 %v338_v47  ;;  %s575_s5 = scalar_lea.hbm %s574_s30, 64  ;;  %p580_p0 = scmp.lt.s32.totalorder %s574_s30, %s833_s3 }
  0x31   : > { %v212_v18 = vmul.f32 256.0, %v524_v17  ;;  %vm216_vm0 = vweird.f32 %v524_v17  ;;  %520 = vset.pattern.permute.xlu0 %v332_v48  ;;  %p576_p6 = scmp.ne.s32.totalorder %s574_s30, %s575_s5  ;;  %p581_p1 = scmp.lt.s32.totalorder %s579_s9, %s575_s5 }
  0x32   : > { %262 = vmatpush.msra.mxu0 %v223_v15 }
  0x33   : > { %v213_v19 = vsub.f32 1.0, %v212_v18  ;;  %p577_p9 = pnand %p576_p6, %p702_p11  ;;  %p582_p3 = por %p581_p1, %p580_p0 }
  0x34   : > { %203 = vadd.xlane.f32.xlu0 %v202_v10  ;;  %263 = vmatpush.msra.mxu0 %v222_v16 }
  0x35   : > { %209 = vadd.xlane.f32.xlu1 %v208_v11  ;;  %v214_v20 = vmul.f32 %v524_v17, %v213_v19  ;;  %p578_p13 = pneg %p577_p9 }
  0x37   : > { %v215_v21 = vadd.f32 %v524_v17, %v214_v20  ;;  %p583_p4 = pnand %p582_p3, %p578_p13 }
  0x39   : > { %v217_v25 = vsel %vm216_vm0, %v524_v17, %v215_v21 }
  0x9f   : > { %v201_v23 = vpop.xlane.xlu0 %200 }
  0xa0   : > { %v207_v24 = vpop.xlane.xlu1 %206  ;;  %v218_v27 = vmul.f32 %v217_v25, %v201_v23 }
  0xa1   : > { %v220_v30 = vmul.f32 %v217_v25, %v207_v24 }
  0xa2   : > { %v232_v36 = vperm.slane %v218_v27, %v231_v26 }
  0xa3   : > { %v238_v38 = vperm.slane %v220_v30, %v237_v29 }
  0xa7   : > { %v204_v31 = vpop.xlane.xlu0 %203 }
  0xa8   : > { %v219_v33 = vmul.f32 %v217_v25, %v204_v31  ;;  %v210_v34 = vpop.xlane.xlu1 %209 }
  0xa9   : > { %v221_v35 = vmul.f32 %v217_v25, %v210_v34 }
  0xaa   : > { %v234_v37 = vperm.slane %v219_v33, %v233_v28 }
  0xab   : > { %v242_v39 = vperm.slane %v221_v35, %v241_v32 }
  0xac   : > { %v236_v40 = vsel %vm235_vm1, %v234_v37, %v232_v36 }
  0xad   : > { %v240_v41 = vsel %vm239_vm2, %v238_v38, %v236_v40 }
  0xae   : > { %v244_v42 = vsel %vm243_vm3, %v242_v39, %v240_v41 }
  0xaf   : > { %456 = vmatmul.msk.f32.vlgmr.msra.gmra.mxu0 %vm245_vm4, %v244_v42 }
 0x12c   : > { %v265_v44 = vpop.f32.mrf.mxu0 }
 0x12d   : > { %v268_v45 = vmax.f32 %v265_v44, 0.0 }
 0x12f   : > { %458 = vmatmul.msk.f32.vlgmr.msra.gmra.mxu1 %vm270_vm6, %v268_v45 }
 0x1ac   : > { %v295_v49 = vpop.f32.mrf.mxu1 }
 0x1ad   : > { %v459_v50 = vmul.f32 -1.442695, %v295_v49 }
 0x1af   : > { %525 = vpow2.f32 %v459_v50 }
 0x1b5   : > { %v526_v51 = vpop.eup %525 }
 0x1b6   : > { %v301_v52 = vadd.f32 1.0, %v526_v51 }
 0x1b8   : > { %527 = vrcp.f32 %v301_v52  ;;  %v313_v56 = vand.u32 2147483648, %v301_v52  ;;  %v311_v58 = vand.u32 2147483647, %v301_v52  ;;  %vm307_vm8 = vweird.f32 %v301_v52 }
 0x1ba   : > { %v314_v60 = vor.u32 1.1754944e-38, %v313_v56  ;;  %vm312_vm10 = vcmp.eq.f32.partialorder %v311_v58, 8.507059e+37 }
 0x1be   : > { %v528_v53 = vpop.eup %527 }
 0x1bf   : > { %v303_v54 = vmul.f32 %v528_v53, %v301_v52  ;;  %vm308_vm7 = vweird.f32 %v528_v53 }
 0x1c0   : > { %vm309_vm9 = vmor %vm307_vm8, %vm308_vm7 }
 0x1c1   : > { %v304_v55 = vsub.f32 1.0, %v303_v54 }
 0x1c3   : > { %v305_v57 = vmul.f32 %v528_v53, %v304_v55 }
 0x1c5   : > { %v306_v59 = vadd.f32 %v528_v53, %v305_v57 }
 0x1c7   : > { %v310_v61 = vsel %vm309_vm9, %v528_v53, %v306_v59 }
 0x1c8   : > { %v315_v62 = vsel %vm312_vm10, %v314_v60, %v310_v61 }
 0x1c9   : > { %v317_v63 = vperm.slane %v315_v62, 0 }
 0x1cb   : > { %340 = vperm.xlu1 %521, %v317_v63   ;;  %334 = vperm.xlu0 %520, %v317_v63  }
 0x1cc   : > { %322 = vperm.xlu2 %518, %v317_v63  }
 0x1d3   : > { %522 = vset.pattern.permute.xlu0 %v338_v47 }
 0x1d4   : > { %519 = vset.pattern.permute.xlu2 %v326_v3 }
 0x1dc   : > { %328 = vperm.xlu2 %519, %v317_v63  }
 0x226   : > { %v323_v5 = vpop.permute.xlu2 %322 }
 0x227   : > { %v342_v10 = vmul.f32 %v323_v5, %v748_v0  ;;  %v343_v11 = vmul.f32 %v323_v5, %v750_v1 }
 0x229   : > { %350 = vst [vmem:[%s190_s22] sm:$0xff] %v342_v10 }
 0x22a   : > { %351 = vst [vmem:[%s190_s22 + $0x8] sm:$0xff] %v343_v11 }
 0x236   : > { %v329_v12 = vpop.permute.xlu2 %328 }
 0x237   : > { %v344_v13 = vmul.f32 %v329_v12, %v760_v6  ;;  %v345_v14 = vmul.f32 %v329_v12, %v762_v7 }
 0x239   : > { %352 = vst [vmem:[%s190_s22 + $0x10] sm:$0xff] %v344_v13 }
 0x23a   : > { %353 = vst [vmem:[%s190_s22 + $0x18] sm:$0xff] %v345_v14 }
 0x23d   : > { %v341_v0 = vpop.permute.xlu1 %340  ;;  %v335_v1 = vpop.permute.xlu0 %334 }
 0x23e   : > { %v348_v15 = vmul.f32 %v341_v0, %v764_v8  ;;  %v349_v16 = vmul.f32 %v341_v0, %v766_v9  ;;  %v346_v6 = vmul.f32 %v335_v1, %v752_v2  ;;  %v347_v7 = vmul.f32 %v335_v1, %v756_v4 }
 0x240   : > { %356 = vst [vmem:[%s190_s22 + $0x30] sm:$0xff] %v348_v15 }
 0x241   : > { %357 = vst [vmem:[%s190_s22 + $0x38] sm:$0xff] %v349_v16 }
 0x242   : > { %354 = vst [vmem:[%s190_s22 + $0x20] sm:$0xff] %v346_v6 }
 0x243   : > { %355 = vst [vmem:[%s190_s22 + $0x28] sm:$0xff] %v347_v7 }
 0x244   : > { %586 = shalt.err (!%p583_p4)
}
 0x245   : > { %s630_s29 = smov 256   ;;  %s631_s17 = smov 16  }
 0x246   : > { %469 = dma.vmem_to_hbm [thread:$0]  (%p702_p11), %s372_s6, 1024, %s374_s23, %s359_s16, %s630_s29, %s630_s29, %s631_s17  }
 0x247 PF: > { %s388_s19 = sand.u32 1, %s613_s12   ;;  %p839_p7 = scmp.ge.s32.totalorder %s625_s15, 2 }
 0x248   : > { %s389_s20 = scalar_lea.sflag [#allocation4], %s388_s19 }
 0x249   : > { %p476_p5 = pnand %p839_p7, %p706_p12 }
 0x24b   : > { %p477_p8 = pneg %p476_p5 }
 0x24d   : > { %608 = dma.done.wait (%p477_p8), %s389_s20, 1024  }
 0x24e   : > { %610 = vsyncadd (%p477_p8), %s389_s20, 4294966272  ;;  %p16_p10 = scmp.ge.s32.totalorder %s677_s18, 4   ;;  %s840_s12 = smov %s617_s13 }
 0x24f   : > { %s841_s13 = smov %s621_s14  ;;  %s842_s14 = smov %s689_s21 }
 0x250   : > { %s843_s15 = smov %s677_s18  ;;  %18 = sbr.rel (!%p16_p10) target bundleno = 5 (0x5), region = 77 }
 0x255   :  { %395 = vsyncpa [#allocation3], 1 }
 0x256   :  { %397 = vsyncpa [#allocation3 + $0x1], 1 }
 0x257   :  { %398 = vsyncpa [#allocation4], 1 }
 0x258   :  { %400 = vsyncpa [#allocation4 + $0x1], 1 }

</bundles_post_ra>
